<compile_context>
chip_gen: v6e
topology: v6e:2x2x1
jax: 0.10.0
libtpu: 0.0.40
codegen_flags: <defaults>
</compile_context>

<pallas_src>
import functools

import jax
import jax.numpy as jnp
from jax.experimental import pallas as pl
from jax.experimental.pallas import tpu as pltpu


def tfidf_kernel(x_ref, w_ref, b_ref, o_ref, acc_ref):
    # x_ref: [TB, TK] bf16, w_ref: [L, TK] bf16, b_ref: [1, L] f32,
    # o_ref: [TB, L] f32, acc_ref: [TB, L] f32 scratch.
    k = pl.program_id(1)

    @pl.when(k == 0)
    def _init():
        # Fold the bias into the accumulator init (no separate epilogue add).
        acc_ref[...] = jnp.broadcast_to(b_ref[...], acc_ref.shape)

    # Contract over the vocab (lane) axis of both operands: [TB,TK] . [L,TK]^T
    acc_ref[...] += jax.lax.dot_general(
        x_ref[...], w_ref[...],
        dimension_numbers=(((1,), (1,)), ((), ())),
        preferred_element_type=jnp.float32)

    @pl.when(k == pl.num_programs(1) - 1)
    def _finalize():
        logits = acc_ref[...]
        m = jnp.max(logits, axis=-1, keepdims=True)
        shifted = logits - m
        lse = jnp.log(jnp.sum(jnp.exp(shifted), axis=-1, keepdims=True))
        o_ref[...] = (shifted - lse).astype(o_ref.dtype)


@functools.partial(jax.jit, static_argnames=("tb", "tk"))
def tfidf_classifier_forward(bow_vec, weight, bias, *, tb=128, tk=512):
    """bow_vec: [B, V] f32, weight: [L, V] f32 (natural nn.Linear layout), bias: [L] f32."""
    B, V = bow_vec.shape
    L = weight.shape[0]

    nb = pl.cdiv(B, tb)
    nk = pl.cdiv(V, tk)
    Bp, Vp = nb * tb, nk * tk

    # Zero-pad: padded vocab columns contribute 0 to the contraction; padded
    # batch rows are sliced off the output. Ship bf16 operands (f32 acc).
    x = jnp.pad(bow_vec, ((0, Bp - B), (0, Vp - V))).astype(jnp.bfloat16)
    w = jnp.pad(weight, ((0, 0), (0, Vp - V))).astype(jnp.bfloat16)
    b2 = bias.reshape(1, L).astype(jnp.float32)

    out = pl.pallas_call(
        tfidf_kernel,
        out_shape=jax.ShapeDtypeStruct((Bp, L), jnp.float32),
        grid=(nb, nk),
        in_specs=[
            pl.BlockSpec((tb, tk), lambda i, k: (i, k)),   # activations
            pl.BlockSpec((L, tk), lambda i, k: (0, k)),    # weight, lane-dense on V
            pl.BlockSpec((1, L), lambda i, k: (0, 0)),     # bias (tiny, constant)
        ],
        out_specs=pl.BlockSpec((tb, L), lambda i, k: (i, 0)),
        scratch_shapes=[pltpu.VMEM((tb, L), jnp.float32)],
        compiler_params=pltpu.CompilerParams(
            dimension_semantics=("parallel", "arbitrary"),
            vmem_limit_bytes=32 * 1024 * 1024,
        ),
    )(x, w, b2)
    return out[:B]


if __name__ == "__main__":
    # batch=256, vocab=2048, labels=8 -> grid (2, 4): exercises batch tiling,
    # vocab-axis accumulation and the final-step epilogue.
    B, VOCAB, NUM_LABELS = 256, 2048, 8
    key = jax.random.PRNGKey(0)
    k_x, k_w, k_b = jax.random.split(key, 3)

    bow_vec = jax.random.uniform(k_x, (B, VOCAB), dtype=jnp.float32)
    # nn.Linear(vocab_size, num_labels): weight [L, V], bias [L].
    bound = 1.0 / (VOCAB ** 0.5)
    weight = jax.random.uniform(k_w, (NUM_LABELS, VOCAB), dtype=jnp.float32,
                                minval=-bound, maxval=bound)
    bias = jax.random.uniform(k_b, (NUM_LABELS,), dtype=jnp.float32,
                              minval=-bound, maxval=bound)

    out = jax.block_until_ready(tfidf_classifier_forward(bow_vec, weight, bias))
    assert out.shape == (B, NUM_LABELS)

    # Reference with matching bf16-operand / f32-accumulate matmul.
    ref_bf16 = jax.nn.log_softmax(
        jnp.dot(bow_vec.astype(jnp.bfloat16), weight.astype(jnp.bfloat16).T,
                preferred_element_type=jnp.float32) + bias, axis=1)
    # Full-precision reference (loose check on bf16 operand rounding).
    ref_f32 = jax.nn.log_softmax(bow_vec @ weight.T + bias, axis=1)

    err_bf16 = float(jnp.max(jnp.abs(out - ref_bf16)))
    err_f32 = float(jnp.max(jnp.abs(out - ref_f32)))
    assert jnp.allclose(out, ref_bf16, atol=1e-4, rtol=1e-4), (
        "mismatch vs bf16 reference: %e" % err_bf16)
    assert jnp.allclose(out, ref_f32, atol=5e-2, rtol=5e-2), (
        "mismatch vs f32 reference: %e" % err_f32)

    print("KERNEL_OK")
</pallas_src>

<mosaic_0001>
module attributes {stable_mosaic.version = 11 : i64} {
  func.func @tfidf_kernel(%arg0: i32, %arg1: i32, %arg2: memref<128x512xbf16, #tpu.memory_space<vmem>>, %arg3: memref<8x512xbf16, #tpu.memory_space<vmem>>, %arg4: memref<1x8xf32, #tpu.memory_space<vmem>>, %arg5: memref<128x8xf32, #tpu.memory_space<vmem>>, %arg6: memref<128x8xf32, #tpu.memory_space<vmem>>) attributes {dimension_semantics = [#tpu.dimension_semantics<parallel>, #tpu.dimension_semantics<arbitrary>], iteration_bounds = array<i64: 2, 4>, scalar_prefetch = 0 : i64, scratch_operands = 1 : i64, tpu.core_type = #tpu.core_type<tc>, window_params = [{transform_indices = @transform_0, window_bounds = array<i64: 128, 512>}, {transform_indices = @transform_1, window_bounds = array<i64: 8, 512>}, {pipeline_mode = #tpu.pipeline_mode<synchronous>, transform_indices = @transform_2, window_bounds = array<i64: 1, 8>}, {transform_indices = @transform_3, window_bounds = array<i64: 128, 8>}]} {
    %c0_i32 = arith.constant 0 : i32
    %0 = arith.cmpi eq, %arg1, %c0_i32 : i32
    %1 = arith.extui %0 : i1 to i32
    %c0_i32_0 = arith.constant 0 : i32
    %2 = arith.cmpi ne, %1, %c0_i32_0 : i32
    scf.if %2 {
      %c0_9 = arith.constant 0 : index
      %c0_10 = arith.constant 0 : index
      %12 = vector.load %arg4[%c0_9, %c0_10] : memref<1x8xf32, #tpu.memory_space<vmem>>, vector<1x8xf32>
      %13 = vector.shape_cast %12 : vector<1x8xf32> to vector<1x8xf32>
      %14 = vector.broadcast %13 : vector<1x8xf32> to vector<128x8xf32>
      %c0_11 = arith.constant 0 : index
      %c0_12 = arith.constant 0 : index
      %15 = vector.load %arg6[%c0_11, %c0_12] : memref<128x8xf32, #tpu.memory_space<vmem>>, vector<128x8xf32>
      tpu.vector_store %arg6[%c0_11, %c0_12], %14 {strides = array<i32>} : memref<128x8xf32, #tpu.memory_space<vmem>>, vector<128x8xf32>,
    } else {
    }
    %c0 = arith.constant 0 : index
    %c0_1 = arith.constant 0 : index
    %3 = vector.load %arg6[%c0, %c0_1] : memref<128x8xf32, #tpu.memory_space<vmem>>, vector<128x8xf32>
    %c0_2 = arith.constant 0 : index
    %c0_3 = arith.constant 0 : index
    %4 = vector.load %arg2[%c0_2, %c0_3] : memref<128x512xbf16, #tpu.memory_space<vmem>>, vector<128x512xbf16>
    %c0_4 = arith.constant 0 : index
    %c0_5 = arith.constant 0 : index
    %5 = vector.load %arg3[%c0_4, %c0_5] : memref<8x512xbf16, #tpu.memory_space<vmem>>, vector<8x512xbf16>
    %cst = arith.constant dense<0.000000e+00> : vector<128x8xf32>
    %6 = tpu.matmul %4, %5, %cst {dimension_numbers = #tpu.dot_dimension_numbers<[1], [1], [0], [0], [0, 0, 1, 0], [], []>} : vector<128x512xbf16>, vector<8x512xbf16>, vector<128x8xf32> -> vector<128x8xf32>
    %7 = arith.addf %3, %6 : vector<128x8xf32>
    %c0_6 = arith.constant 0 : index
    %c0_7 = arith.constant 0 : index
    %8 = vector.load %arg6[%c0_6, %c0_7] : memref<128x8xf32, #tpu.memory_space<vmem>>, vector<128x8xf32>
    tpu.vector_store %arg6[%c0_6, %c0_7], %7 {strides = array<i32>} : memref<128x8xf32, #tpu.memory_space<vmem>>, vector<128x8xf32>,
    %c3_i32 = arith.constant 3 : i32
    %9 = arith.cmpi eq, %arg1, %c3_i32 : i32
    %10 = arith.extui %9 : i1 to i32
    %c0_i32_8 = arith.constant 0 : i32
    %11 = arith.cmpi ne, %10, %c0_i32_8 : i32
    scf.if %11 {
      %c0_9 = arith.constant 0 : index
      %c0_10 = arith.constant 0 : index
      %12 = vector.load %arg6[%c0_9, %c0_10] : memref<128x8xf32, #tpu.memory_space<vmem>>, vector<128x8xf32>
      %cst_11 = arith.constant dense<0xFF800000> : vector<128xf32>
      %13 = vector.multi_reduction <maximumf>, %12, %cst_11 [1] : vector<128x8xf32> to vector<128xf32>
      %14 = vector.shape_cast %13 : vector<128xf32> to vector<128x1xf32>
      %15 = vector.broadcast %14 : vector<128x1xf32> to vector<128x8xf32>
      %16 = arith.subf %12, %15 : vector<128x8xf32>
      %17 = math.exp %16 : vector<128x8xf32>
      %cst_12 = arith.constant dense<0.000000e+00> : vector<128xf32>
      %18 = vector.multi_reduction <add>, %17, %cst_12 [1] : vector<128x8xf32> to vector<128xf32>
      %19 = vector.shape_cast %18 : vector<128xf32> to vector<128x1xf32>
      %20 = math.log %19 : vector<128x1xf32>
      %21 = vector.broadcast %20 : vector<128x1xf32> to vector<128x8xf32>
      %22 = arith.subf %16, %21 : vector<128x8xf32>
      %c0_13 = arith.constant 0 : index
      %c0_14 = arith.constant 0 : index
      %23 = vector.load %arg5[%c0_13, %c0_14] : memref<128x8xf32, #tpu.memory_space<vmem>>, vector<128x8xf32>
      tpu.vector_store %arg5[%c0_13, %c0_14], %22 {strides = array<i32>} : memref<128x8xf32, #tpu.memory_space<vmem>>, vector<128x8xf32>,
    } else {
    }
    return
  }
  func.func @transform_0(%arg0: i32, %arg1: i32) -> (i32, i32) {
    %c0_i32 = arith.constant 0 : i32
    return %arg0, %arg1 : i32, i32
  }
  func.func @transform_1(%arg0: i32, %arg1: i32) -> (i32, i32) {
    %c0_i32 = arith.constant 0 : i32
    %c0_i32_0 = arith.constant 0 : i32
    return %c0_i32, %arg1 : i32, i32
  }
  func.func @transform_2(%arg0: i32, %arg1: i32) -> (i32, i32) {
    %c0_i32 = arith.constant 0 : i32
    %c0_i32_0 = arith.constant 0 : i32
    %c0_i32_1 = arith.constant 0 : i32
    return %c0_i32, %c0_i32_0 : i32, i32
  }
  func.func @transform_3(%arg0: i32, %arg1: i32) -> (i32, i32) {
    %c0_i32 = arith.constant 0 : i32
    %c0_i32_0 = arith.constant 0 : i32
    return %arg0, %c0_i32 : i32, i32
  }
}

</mosaic_0001>

<bundles_post_ra>
// kernel: tfidf_classifier_forward.1
= control target key start
LH: loop header
LB: loop body
LE: loop exit
PB: predicated region body
PF: predicated region fallthrough
CT: control target
= control target key end

     0   :  { %s1397_s12 = smov 0   ;;  %s1399_s13 = smov 0   ;;  %s1782_s0 = inlined_call_operand.vmem [shape: bf16[256,2048], index: 0, kind: input, shape index: {}]   ;;  %s1783_s1 = inlined_call_operand.vmem [shape: bf16[8,2048], index: 1, kind: input, shape index: {}]   ;;  %s1784_s2 = inlined_call_operand.vmem [shape: f32[1,8], index: 2, kind: input, shape index: {}]   ;;  %s1785_s3 = inlined_call_operand.vmem [shape: f32[256,8], index: 3, kind: output, shape index: {}]  }
   0x1   :  { %s1401_s14 = smov 0   ;;  %s1403_s15 = smov 0  }
   0x2   :  { %s1405_s16 = smov 0   ;;  %s1407_s17 = smov 0  }
   0x3   :  { %s1409_s18 = smov 0  }
   0x4 LB: > { %s22_s19 = sadd.s32 1, %s1367_s16  ;;  %s25_s20 = sadd.s32 1, %s1371_s17  ;;  %s1375_s18 = sphi %s1409_s18, %s13_s18   ;;  %s1371_s17 = sphi %s1407_s17, %s1791_s17   ;;  %s1367_s16 = sphi %s1405_s16, %s1790_s16   ;;  %s1363_s15 = sphi %s1403_s15, %s1789_s15   ;;  %s1359_s14 = sphi %s1401_s14, %s1788_s14   ;;  %s1355_s13 = sphi %s1399_s13, %s1787_s13   ;;  %s1351_s12 = sphi %s1397_s12, %s1786_s12  }
   0x5   : > { %p23_p0 = scmp.ge.s32.totalorder %s22_s19, 4  ;;  %p41_p1 = scmp.ne.s32.totalorder %s1355_s13, %s1351_s12 }
   0x6   : > { %p42_p2 = scmp.eq.s32.totalorder %s1375_s18, 0  ;;  %s34_s24 = sadd.s32 1, %s1355_s13 }
   0x7   : > { %s1793_s19 = smov (%p23_p0, %s22_s19), 0  ;;  %s1795_s20 = smov (!%p23_p0, %s25_s20), %s1371_s17 }
   0x8   : > { %p43_p3 = por %p42_p2, %p41_p1  ;;  %p27_p4 = scmp.ge.s32.totalorder %s1795_s20, 2 }
   0x9   : > { %s30_s21 = ssub.s32 %s1367_s16, %s1793_s19  ;;  %p1095_p6 = scmp.ge.s32.totalorder %s1375_s18, 8 }
   0xa   : > { %s1797_s20 = smov (%p27_p4, %s1795_s20), 0 }
   0xb   : > { %s29_s22 = ssub.s32 %s1371_s17, %s1797_s20  ;;  %143 = sbr.rel (%p1095_p6) target bundleno = 39 (0x27), region = 20 }
   0xc   : > { %s31_s23 = sor.u32 %s30_s21, %s29_s22 }
   0xd   : > { %p32_p5 = scmp.eq.s32.totalorder %s31_s23, 0 }
   0xf   : > { %s1448_s25 = scalar_select %p32_p5, %s1355_s13, %s34_s24  }
  0x10   : > { %146 = sbr.rel (!%p43_p3) target bundleno = 39 (0x27), region = 24  ;;  %s148_s26 = sand.u32 (%p43_p3), 1, %s1355_s13  }
  0x11   : > { %s1098_s27 = sshll.u32 (%p43_p3), %s1367_s16, 2  ;;  %s1096_s28 = sshll.u32 (%p43_p3), %s148_s26, 8 }
  0x12   : > { %s1148_s29 = sshll.u32 (%p43_p3), %s1371_s17, 8  ;;  %s1462_s8 = scalar_lea.vmem (%p43_p3), [#allocation3], %s1096_s28 }
  0x13   : > { %s154_s30 = sadd.s32 (%p43_p3), %s1148_s29, %s1098_s27 }
  0x14   : > { %s1100_s4 = sshll.u32 (%p43_p3), %s154_s30, 2 }
  0x15   : > { %s1457_s7 = scalar_lea.vmem %s1782_s0, %s1100_s4 }
  0x16   : > { %v169_v0 = vld [vmem:[%s1457_s7] sm:$0xff]  ;;  %v171_v1 = vld [vmem:[%s1457_s7 + $0x8] sm:$0xff] }
  0x17   : > { %v173_v2 = vld [vmem:[%s1457_s7 + $0x40] sm:$0xff]  ;;  %170 = vst [vmem:[%s1462_s8] sm:$0xff] %v169_v0  ;;  %172 = vst [vmem:[%s1462_s8 + $0x8] sm:$0xff] %v171_v1  ;;  %v175_v3 = vld [vmem:[%s1457_s7 + $0x48] sm:$0xff] }
  0x18   : > { %174 = vst [vmem:[%s1462_s8 + $0x10] sm:$0xff] %v173_v2  ;;  %v177_v4 = vld [vmem:[%s1457_s7 + $0x80] sm:$0xff]  ;;  %v179_v5 = vld [vmem:[%s1457_s7 + $0x88] sm:$0xff]  ;;  %176 = vst [vmem:[%s1462_s8 + $0x18] sm:$0xff] %v175_v3 }
  0x19   : > { %178 = vst [vmem:[%s1462_s8 + $0x20] sm:$0xff] %v177_v4  ;;  %180 = vst [vmem:[%s1462_s8 + $0x28] sm:$0xff] %v179_v5  ;;  %v181_v6 = vld [vmem:[%s1457_s7 + $0xc0] sm:$0xff]  ;;  %v183_v7 = vld [vmem:[%s1457_s7 + $0xc8] sm:$0xff] }
  0x1a   : > { %v185_v8 = vld [vmem:[%s1457_s7 + $0x100] sm:$0xff]  ;;  %182 = vst [vmem:[%s1462_s8 + $0x30] sm:$0xff] %v181_v6  ;;  %184 = vst [vmem:[%s1462_s8 + $0x38] sm:$0xff] %v183_v7  ;;  %v187_v9 = vld [vmem:[%s1457_s7 + $0x108] sm:$0xff] }
  0x1b   : > { %186 = vst [vmem:[%s1462_s8 + $0x40] sm:$0xff] %v185_v8  ;;  %v189_v10 = vld [vmem:[%s1457_s7 + $0x140] sm:$0xff]  ;;  %v191_v11 = vld [vmem:[%s1457_s7 + $0x148] sm:$0xff]  ;;  %188 = vst [vmem:[%s1462_s8 + $0x48] sm:$0xff] %v187_v9 }
  0x1c   : > { %190 = vst [vmem:[%s1462_s8 + $0x50] sm:$0xff] %v189_v10  ;;  %192 = vst [vmem:[%s1462_s8 + $0x58] sm:$0xff] %v191_v11  ;;  %v193_v12 = vld [vmem:[%s1457_s7 + $0x180] sm:$0xff]  ;;  %v195_v13 = vld [vmem:[%s1457_s7 + $0x188] sm:$0xff] }
  0x1d   : > { %v197_v14 = vld [vmem:[%s1457_s7 + $0x1c0] sm:$0xff]  ;;  %194 = vst [vmem:[%s1462_s8 + $0x60] sm:$0xff] %v193_v12  ;;  %196 = vst [vmem:[%s1462_s8 + $0x68] sm:$0xff] %v195_v13  ;;  %v199_v15 = vld [vmem:[%s1457_s7 + $0x1c8] sm:$0xff] }
  0x1e   : > { %198 = vst [vmem:[%s1462_s8 + $0x70] sm:$0xff] %v197_v14  ;;  %v201_v16 = vld [vmem:[%s1457_s7 + $0x200] sm:$0xff]  ;;  %v203_v17 = vld [vmem:[%s1457_s7 + $0x208] sm:$0xff]  ;;  %200 = vst [vmem:[%s1462_s8 + $0x78] sm:$0xff] %v199_v15 }
  0x1f   : > { %202 = vst [vmem:[%s1462_s8 + $0x80] sm:$0xff] %v201_v16  ;;  %204 = vst [vmem:[%s1462_s8 + $0x88] sm:$0xff] %v203_v17  ;;  %v205_v18 = vld [vmem:[%s1457_s7 + $0x240] sm:$0xff]  ;;  %v207_v19 = vld [vmem:[%s1457_s7 + $0x248] sm:$0xff] }
  0x20   : > { %v209_v20 = vld [vmem:[%s1457_s7 + $0x280] sm:$0xff]  ;;  %206 = vst [vmem:[%s1462_s8 + $0x90] sm:$0xff] %v205_v18  ;;  %208 = vst [vmem:[%s1462_s8 + $0x98] sm:$0xff] %v207_v19  ;;  %v211_v21 = vld [vmem:[%s1457_s7 + $0x288] sm:$0xff] }
  0x21   : > { %210 = vst [vmem:[%s1462_s8 + $0xa0] sm:$0xff] %v209_v20  ;;  %v213_v22 = vld [vmem:[%s1457_s7 + $0x2c0] sm:$0xff]  ;;  %v215_v23 = vld [vmem:[%s1457_s7 + $0x2c8] sm:$0xff]  ;;  %212 = vst [vmem:[%s1462_s8 + $0xa8] sm:$0xff] %v211_v21 }
  0x22   : > { %214 = vst [vmem:[%s1462_s8 + $0xb0] sm:$0xff] %v213_v22  ;;  %216 = vst [vmem:[%s1462_s8 + $0xb8] sm:$0xff] %v215_v23  ;;  %v217_v24 = vld [vmem:[%s1457_s7 + $0x300] sm:$0xff]  ;;  %v219_v25 = vld [vmem:[%s1457_s7 + $0x308] sm:$0xff] }
  0x23   : > { %v221_v26 = vld [vmem:[%s1457_s7 + $0x340] sm:$0xff]  ;;  %218 = vst [vmem:[%s1462_s8 + $0xc0] sm:$0xff] %v217_v24  ;;  %220 = vst [vmem:[%s1462_s8 + $0xc8] sm:$0xff] %v219_v25  ;;  %v223_v27 = vld [vmem:[%s1457_s7 + $0x348] sm:$0xff] }
  0x24   : > { %222 = vst [vmem:[%s1462_s8 + $0xd0] sm:$0xff] %v221_v26  ;;  %v225_v28 = vld [vmem:[%s1457_s7 + $0x380] sm:$0xff]  ;;  %v227_v29 = vld [vmem:[%s1457_s7 + $0x388] sm:$0xff]  ;;  %224 = vst [vmem:[%s1462_s8 + $0xd8] sm:$0xff] %v223_v27 }
  0x25   : > { %226 = vst [vmem:[%s1462_s8 + $0xe0] sm:$0xff] %v225_v28  ;;  %228 = vst [vmem:[%s1462_s8 + $0xe8] sm:$0xff] %v227_v29  ;;  %v229_v30 = vld [vmem:[%s1457_s7 + $0x3c0] sm:$0xff]  ;;  %v231_v31 = vld [vmem:[%s1457_s7 + $0x3c8] sm:$0xff] }
  0x26   : > { %230 = vst [vmem:[%s1462_s8 + $0xf0] sm:$0xff] %v229_v30  ;;  %232 = vst [vmem:[%s1462_s8 + $0xf8] sm:$0xff] %v231_v31 }
  0x27 PF: > { %p1101_p7 = scmp.ge.s32.totalorder %s1375_s18, 1  ;;  %p246_p8 = scmp.lt.s32.totalorder %s1375_s18, 9 }
  0x29   : > { %p247_p9 = pnand %p1101_p7, %p246_p8 }
  0x2a   : > { %s253_s9 = sand.u32 (!%p247_p9), 1, %s1351_s12   ;;  %s1103_s10 = sshll.u32 (!%p247_p9), %s1359_s14, 2 }
  0x2b   : > { %250 = sbr.rel (%p247_p9) target bundleno = 682 (0x2aa), region = 51  ;;  %s1102_s11 = sshll.u32 (!%p247_p9), %s253_s9, 8 }
  0x2c   : > { %p284_p10 = scmp.lt.s32.totalorder (!%p247_p9), %s1103_s10, 15  ;;  %s1105_s21 = sshll.u32 (!%p247_p9), %s1363_s15, 4 }
  0x2d   : > { %p290_p11 = scmp.lt.s32.totalorder (!%p247_p9), %s1105_s21, 31  ;;  %s1538_s4 = scalar_lea.vmem (!%p247_p9), [#allocation3], %s1102_s11 }
  0x2e   : > { %p1107_p12 = scmp.ne.s32.totalorder (!%p247_p9), %s1359_s14, 0 }
  0x30   : > { %s1799_s10 = smov (!%p284_p10, %s1103_s10), 15  ;;  %s1801_s21 = smov (!%p290_p11, %s1105_s21), 31 }
  0x31   : > { %s1104_s22 = sshll.u32 %s1799_s10, 2  ;;  %s1106_s27 = sshll.u32 %s1801_s21, 3 }
  0x32   : > { %s287_s26 = scalar_lea.vmem %s1783_s1, %s1104_s22  ;;  %s1536_s30 = scalar_lea.vmem %s1785_s3, %s1106_s27 }
  0x33   : > { %299 = sbr.rel (%p1107_p12) target bundleno = 65 (0x41), region = 59 }
  0x38   : > { %v1108_v32 = vld [vmem:[%s1784_s2] ss:$0 sm:$0xff]  ;;  %vm307_vm0 = vcmask 64512  }
  0x39   : > { %308 = vst.msk [vmem:[#allocation2] sm:$0xff] %vm307_vm0, %v1108_v32  ;;  %309 = vst.msk [vmem:[#allocation2 + $0x8] sm:$0xff] %vm307_vm0, %v1108_v32 }
  0x3a   : > { %310 = vst.msk [vmem:[#allocation2 + $0x10] sm:$0xff] %vm307_vm0, %v1108_v32  ;;  %311 = vst.msk [vmem:[#allocation2 + $0x18] sm:$0xff] %vm307_vm0, %v1108_v32 }
  0x3b   : > { %312 = vst.msk [vmem:[#allocation2 + $0x20] sm:$0xff] %vm307_vm0, %v1108_v32  ;;  %313 = vst.msk [vmem:[#allocation2 + $0x28] sm:$0xff] %vm307_vm0, %v1108_v32 }
  0x3c   : > { %314 = vst.msk [vmem:[#allocation2 + $0x30] sm:$0xff] %vm307_vm0, %v1108_v32  ;;  %315 = vst.msk [vmem:[#allocation2 + $0x38] sm:$0xff] %vm307_vm0, %v1108_v32 }
  0x3d   : > { %316 = vst.msk [vmem:[#allocation2 + $0x40] sm:$0xff] %vm307_vm0, %v1108_v32  ;;  %317 = vst.msk [vmem:[#allocation2 + $0x48] sm:$0xff] %vm307_vm0, %v1108_v32 }
  0x3e   : > { %318 = vst.msk [vmem:[#allocation2 + $0x50] sm:$0xff] %vm307_vm0, %v1108_v32  ;;  %319 = vst.msk [vmem:[#allocation2 + $0x58] sm:$0xff] %vm307_vm0, %v1108_v32 }
  0x3f   : > { %320 = vst.msk [vmem:[#allocation2 + $0x60] sm:$0xff] %vm307_vm0, %v1108_v32  ;;  %321 = vst.msk [vmem:[#allocation2 + $0x68] sm:$0xff] %vm307_vm0, %v1108_v32 }
  0x40   : > { %322 = vst.msk [vmem:[#allocation2 + $0x70] sm:$0xff] %vm307_vm0, %v1108_v32  ;;  %323 = vst.msk [vmem:[#allocation2 + $0x78] sm:$0xff] %vm307_vm0, %v1108_v32 }
  0x41 PF: > { %v372_v33 = vld [vmem:[%s287_s26] sm:$0xff]  ;;  %v373_v34 = vld [vmem:[%s287_s26 + $0x8] sm:$0xff]  ;;  %vm758_vm1 = vcmask 64512   ;;  %v326_v22 = vld [vmem:[#allocation2 + $0x10] sm:$0xff]  ;;  %p1145_p13 = scmp.ne.s32.totalorder %s1359_s14, 3 }
  0x42   : > { %v1142_v35 = vcombine.high %v372_v33, %v372_v33  ;;  %v1144_v36 = vcombine.high %v373_v34, %v373_v34  ;;  %v1141_v37 = vcombine.low %v372_v33, %v372_v33  ;;  %v1143_v38 = vcombine.low %v373_v34, %v373_v34  ;;  %v1211_v39 = vld [vmem:[%s1538_s4 + $0x4] ss:$16 sps:$4 sm:$0xff]   ;;  %v1214_v40 = vld [vmem:[%s1538_s4 + $0xc] ss:$16 sps:$4 sm:$0xff]   ;;  %v1209_v41 = vld [vmem:[%s1538_s4] ss:$16 sps:$4 sm:$0xff]  }
  0x43   : > { %580 = vmatprep.mubr.bf16.mxu0 %v1211_v39  ;;  %677 = vmatprep.mubr.bf16.mxu1 %v1214_v40  ;;  %v1212_v42 = vld [vmem:[%s1538_s4 + $0x8] ss:$16 sps:$4 sm:$0xff]   ;;  %v1215_v43 = vld [vmem:[%s1538_s4 + $0x24] ss:$16 sps:$4 sm:$0xff]   ;;  %v1217_v44 = vld [vmem:[%s1538_s4 + $0x2c] ss:$16 sps:$4 sm:$0xff]  }
  0x44   : > { %562 = vmatprep.subr.bf16.mxu0 %v1142_v35  ;;  %659 = vmatprep.subr.bf16.mxu1 %v1144_v36  ;;  %v1219_v45 = vld [vmem:[%s1538_s4 + $0x20] ss:$16 sps:$4 sm:$0xff]   ;;  %v1220_v46 = vld [vmem:[%s1538_s4 + $0x28] ss:$16 sps:$4 sm:$0xff]   ;;  %v1221_v47 = vld [vmem:[%s1538_s4 + $0x44] ss:$16 sps:$4 sm:$0xff]  }
  0x45   : > { %563 = vmatpush1.bf16.xpose.msra.mxu0 %v1141_v37  ;;  %660 = vmatpush1.bf16.xpose.msra.mxu1 %v1143_v38  ;;  %v1223_v48 = vld [vmem:[%s1538_s4 + $0x4c] ss:$16 sps:$4 sm:$0xff]   ;;  %v1225_v49 = vld [vmem:[%s1538_s4 + $0x40] ss:$16 sps:$4 sm:$0xff]   ;;  %v1226_v50 = vld [vmem:[%s1538_s4 + $0x48] ss:$16 sps:$4 sm:$0xff]  }
  0x46   : > { %v1227_v51 = vld [vmem:[%s1538_s4 + $0x64] ss:$16 sps:$4 sm:$0xff]   ;;  %v1229_v52 = vld [vmem:[%s1538_s4 + $0x6c] ss:$16 sps:$4 sm:$0xff]   ;;  %v1231_v53 = vld [vmem:[%s1538_s4 + $0x60] ss:$16 sps:$4 sm:$0xff]  }
  0x47   : > { %v1232_v54 = vld [vmem:[%s1538_s4 + $0x68] ss:$16 sps:$4 sm:$0xff]   ;;  %v1233_v55 = vld [vmem:[%s1538_s4 + $0x84] ss:$16 sps:$4 sm:$0xff]   ;;  %v1235_v56 = vld [vmem:[%s1538_s4 + $0x8c] ss:$16 sps:$4 sm:$0xff]  }
  0x48   : > { %v1237_v57 = vld [vmem:[%s1538_s4 + $0x80] ss:$16 sps:$4 sm:$0xff]   ;;  %v1238_v58 = vld [vmem:[%s1538_s4 + $0x88] ss:$16 sps:$4 sm:$0xff]   ;;  %v1239_v59 = vld [vmem:[%s1538_s4 + $0xa4] ss:$16 sps:$4 sm:$0xff]  }
  0x49   : > { %v1241_v60 = vld [vmem:[%s1538_s4 + $0xac] ss:$16 sps:$4 sm:$0xff]   ;;  %v1243_v61 = vld [vmem:[%s1538_s4 + $0xa0] ss:$16 sps:$4 sm:$0xff]   ;;  %v1244_v62 = vld [vmem:[%s1538_s4 + $0xa8] ss:$16 sps:$4 sm:$0xff]  }
  0x4a   : > { %v1245_v63 = vld [vmem:[%s1538_s4 + $0xc4] ss:$16 sps:$4 sm:$0xff]   ;;  %v1247_v0 = vld [vmem:[%s1538_s4 + $0xcc] ss:$16 sps:$4 sm:$0xff]   ;;  %v1249_v1 = vld [vmem:[%s1538_s4 + $0xc0] ss:$16 sps:$4 sm:$0xff]  }
  0x4b   : > { %v1250_v2 = vld [vmem:[%s1538_s4 + $0xc8] ss:$16 sps:$4 sm:$0xff]   ;;  %v1251_v3 = vld [vmem:[%s1538_s4 + $0xe4] ss:$16 sps:$4 sm:$0xff]   ;;  %v1253_v4 = vld [vmem:[%s1538_s4 + $0xec] ss:$16 sps:$4 sm:$0xff]  }
  0x4c   : > { %581 = vmatmul.mubr.bf16.vlgmr.msra.gmra.mxu0 %v1209_v41  ;;  %678 = vmatmul.mubr.bf16.vlgmr.msra.gmra.mxu1 %v1212_v42  ;;  %v1255_v5 = vld [vmem:[%s1538_s4 + $0xe0] ss:$16 sps:$4 sm:$0xff]   ;;  %v1256_v6 = vld [vmem:[%s1538_s4 + $0xe8] ss:$16 sps:$4 sm:$0xff]  }
  0x4d   : > { %588 = vmatprep.mubr.bf16.mxu0 %v1215_v43  ;;  %685 = vmatprep.mubr.bf16.mxu1 %v1217_v44  ;;  %v324_v8 = vld [vmem:[#allocation2] sm:$0xff]  ;;  %v325_v15 = vld [vmem:[#allocation2 + $0x8] sm:$0xff]  ;;  %v327_v29 = vld [vmem:[#allocation2 + $0x18] sm:$0xff] }
  0x4e   : > { %v328_v36 = vld [vmem:[#allocation2 + $0x20] sm:$0xff]  ;;  %v329_v43 = vld [vmem:[#allocation2 + $0x28] sm:$0xff] }
  0x54   : > { %589 = vmatmul.mubr.bf16.gmra.mxu0 %v1219_v45  ;;  %686 = vmatmul.mubr.bf16.gmra.mxu1 %v1220_v46 }
  0x55   : > { %596 = vmatprep.mubr.bf16.mxu0 %v1221_v47  ;;  %693 = vmatprep.mubr.bf16.mxu1 %v1223_v48 }
  0x5c   : > { %597 = vmatmul.mubr.bf16.gmra.mxu0 %v1225_v49  ;;  %694 = vmatmul.mubr.bf16.gmra.mxu1 %v1226_v50  ;;  %v330_v50 = vld [vmem:[#allocation2 + $0x30] sm:$0xff] }
  0x5d   : > { %604 = vmatprep.mubr.bf16.mxu0 %v1227_v51  ;;  %701 = vmatprep.mubr.bf16.mxu1 %v1229_v52 }
  0x64   : > { %605 = vmatmul.mubr.bf16.gmra.mxu0 %v1231_v53  ;;  %702 = vmatmul.mubr.bf16.gmra.mxu1 %v1232_v54 }
  0x65   : > { %612 = vmatprep.mubr.bf16.mxu0 %v1233_v55  ;;  %709 = vmatprep.mubr.bf16.mxu1 %v1235_v56 }
  0x6c   : > { %613 = vmatmul.mubr.bf16.gmra.mxu0 %v1237_v57  ;;  %710 = vmatmul.mubr.bf16.gmra.mxu1 %v1238_v58  ;;  %v331_v57 = vld [vmem:[#allocation2 + $0x38] sm:$0xff] }
  0x6d   : > { %620 = vmatprep.mubr.bf16.mxu0 %v1239_v59  ;;  %717 = vmatprep.mubr.bf16.mxu1 %v1241_v60 }
  0x74   : > { %621 = vmatmul.mubr.bf16.gmra.mxu0 %v1243_v61  ;;  %718 = vmatmul.mubr.bf16.gmra.mxu1 %v1244_v62 }
  0x75   : > { %628 = vmatprep.mubr.bf16.mxu0 %v1245_v63  ;;  %725 = vmatprep.mubr.bf16.mxu1 %v1247_v0  ;;  %v332_v0 = vld [vmem:[#allocation2 + $0x40] sm:$0xff] }
  0x7c   : > { %629 = vmatmul.mubr.bf16.gmra.mxu0 %v1249_v1  ;;  %726 = vmatmul.mubr.bf16.gmra.mxu1 %v1250_v2 }
  0x7d   : > { %636 = vmatprep.mubr.bf16.mxu0 %v1251_v3  ;;  %733 = vmatprep.mubr.bf16.mxu1 %v1253_v4 }
  0x84   : > { %637 = vmatmul.mubr.bf16.gmra.mxu0 %v1255_v5  ;;  %734 = vmatmul.mubr.bf16.gmra.mxu1 %v1256_v6 }
 0x10c   : > { %v582_v7 = vpop.f32.mrf.mxu0  ;;  %v679_v9 = vpop.f32.mrf.mxu1 }
 0x10d   : > { %v680_v10 = vadd.f32 %v679_v9, %v582_v7  ;;  %v333_v7 = vld [vmem:[#allocation2 + $0x48] sm:$0xff] }
 0x10e   : > { %v584_v11 = vpop.f32.mrf.mxu0  ;;  %v681_v12 = vpop.f32.mrf.mxu1 }
 0x10f   : > { %v742_v13 = vadd.f32 %v680_v10, %v324_v8 }
 0x110   : > { %v585_v14 = vpop.f32.mrf.mxu0  ;;  %v682_v16 = vpop.f32.mrf.mxu1 }
 0x111   : > { %759 = vst.msk [vmem:[#allocation2] sm:$0xff] %vm758_vm1, %v742_v13  ;;  %v683_v17 = vadd.f32 %v682_v16, %v585_v14  ;;  %v334_v14 = vld [vmem:[#allocation2 + $0x50] sm:$0xff] }
 0x112   : > { %v587_v18 = vpop.f32.mrf.mxu0  ;;  %v684_v19 = vpop.f32.mrf.mxu1 }
 0x113   : > { %v743_v20 = vadd.f32 %v683_v17, %v325_v15 }
 0x114   : > { %v590_v21 = vpop.f32.mrf.mxu0  ;;  %v687_v23 = vpop.f32.mrf.mxu1 }
 0x115   : > { %760 = vst.msk [vmem:[#allocation2 + $0x8] sm:$0xff] %vm758_vm1, %v743_v20  ;;  %v688_v24 = vadd.f32 %v687_v23, %v590_v21  ;;  %v335_v21 = vld [vmem:[#allocation2 + $0x58] sm:$0xff] }
 0x116   : > { %v592_v25 = vpop.f32.mrf.mxu0  ;;  %v689_v26 = vpop.f32.mrf.mxu1 }
 0x117   : > { %v744_v27 = vadd.f32 %v688_v24, %v326_v22 }
 0x118   : > { %v593_v28 = vpop.f32.mrf.mxu0  ;;  %v690_v30 = vpop.f32.mrf.mxu1 }
 0x119   : > { %761 = vst.msk [vmem:[#allocation2 + $0x10] sm:$0xff] %vm758_vm1, %v744_v27  ;;  %v691_v31 = vadd.f32 %v690_v30, %v593_v28  ;;  %v336_v28 = vld [vmem:[#allocation2 + $0x60] sm:$0xff] }
 0x11a   : > { %v595_v32 = vpop.f32.mrf.mxu0  ;;  %v692_v33 = vpop.f32.mrf.mxu1 }
 0x11b   : > { %v745_v34 = vadd.f32 %v691_v31, %v327_v29 }
 0x11c   : > { %v598_v35 = vpop.f32.mrf.mxu0  ;;  %v695_v37 = vpop.f32.mrf.mxu1 }
 0x11d   : > { %762 = vst.msk [vmem:[#allocation2 + $0x18] sm:$0xff] %vm758_vm1, %v745_v34  ;;  %v696_v38 = vadd.f32 %v695_v37, %v598_v35  ;;  %v337_v35 = vld [vmem:[#allocation2 + $0x68] sm:$0xff] }
 0x11e   : > { %v600_v39 = vpop.f32.mrf.mxu0  ;;  %v697_v40 = vpop.f32.mrf.mxu1 }
 0x11f   : > { %v746_v41 = vadd.f32 %v696_v38, %v328_v36 }
 0x120   : > { %v601_v42 = vpop.f32.mrf.mxu0  ;;  %v698_v44 = vpop.f32.mrf.mxu1 }
 0x121   : > { %763 = vst.msk [vmem:[#allocation2 + $0x20] sm:$0xff] %vm758_vm1, %v746_v41  ;;  %v699_v45 = vadd.f32 %v698_v44, %v601_v42  ;;  %v338_v42 = vld [vmem:[#allocation2 + $0x70] sm:$0xff] }
 0x122   : > { %v603_v46 = vpop.f32.mrf.mxu0  ;;  %v700_v47 = vpop.f32.mrf.mxu1 }
 0x123   : > { %v747_v48 = vadd.f32 %v699_v45, %v329_v43 }
 0x124   : > { %v606_v49 = vpop.f32.mrf.mxu0  ;;  %v703_v51 = vpop.f32.mrf.mxu1 }
 0x125   : > { %764 = vst.msk [vmem:[#allocation2 + $0x28] sm:$0xff] %vm758_vm1, %v747_v48  ;;  %v704_v52 = vadd.f32 %v703_v51, %v606_v49  ;;  %v339_v49 = vld [vmem:[#allocation2 + $0x78] sm:$0xff] }
 0x126   : > { %v608_v53 = vpop.f32.mrf.mxu0  ;;  %v705_v54 = vpop.f32.mrf.mxu1 }
 0x127   : > { %v748_v55 = vadd.f32 %v704_v52, %v330_v50 }
 0x128   : > { %v609_v56 = vpop.f32.mrf.mxu0  ;;  %v706_v58 = vpop.f32.mrf.mxu1 }
 0x129   : > { %765 = vst.msk [vmem:[#allocation2 + $0x30] sm:$0xff] %vm758_vm1, %v748_v55  ;;  %v707_v59 = vadd.f32 %v706_v58, %v609_v56 }
 0x12a   : > { %v611_v60 = vpop.f32.mrf.mxu0  ;;  %v708_v61 = vpop.f32.mrf.mxu1 }
 0x12b   : > { %v749_v62 = vadd.f32 %v707_v59, %v331_v57 }
 0x12c   : > { %v614_v63 = vpop.f32.mrf.mxu0  ;;  %v711_v1 = vpop.f32.mrf.mxu1 }
 0x12d   : > { %766 = vst.msk [vmem:[#allocation2 + $0x38] sm:$0xff] %vm758_vm1, %v749_v62  ;;  %v712_v2 = vadd.f32 %v711_v1, %v614_v63 }
 0x12e   : > { %v616_v3 = vpop.f32.mrf.mxu0  ;;  %v713_v4 = vpop.f32.mrf.mxu1 }
 0x12f   : > { %v750_v5 = vadd.f32 %v712_v2, %v332_v0 }
 0x130   : > { %v617_v6 = vpop.f32.mrf.mxu0  ;;  %v714_v8 = vpop.f32.mrf.mxu1 }
 0x131   : > { %767 = vst.msk [vmem:[#allocation2 + $0x40] sm:$0xff] %vm758_vm1, %v750_v5  ;;  %v715_v9 = vadd.f32 %v714_v8, %v617_v6 }
 0x132   : > { %v619_v10 = vpop.f32.mrf.mxu0  ;;  %v716_v11 = vpop.f32.mrf.mxu1 }
 0x133   : > { %v751_v12 = vadd.f32 %v715_v9, %v333_v7 }
 0x134   : > { %v622_v13 = vpop.f32.mrf.mxu0  ;;  %v719_v15 = vpop.f32.mrf.mxu1 }
 0x135   : > { %768 = vst.msk [vmem:[#allocation2 + $0x48] sm:$0xff] %vm758_vm1, %v751_v12  ;;  %v720_v16 = vadd.f32 %v719_v15, %v622_v13 }
 0x136   : > { %v624_v17 = vpop.f32.mrf.mxu0  ;;  %v721_v18 = vpop.f32.mrf.mxu1 }
 0x137   : > { %v752_v19 = vadd.f32 %v720_v16, %v334_v14 }
 0x138   : > { %v625_v20 = vpop.f32.mrf.mxu0  ;;  %v722_v22 = vpop.f32.mrf.mxu1 }
 0x139   : > { %769 = vst.msk [vmem:[#allocation2 + $0x50] sm:$0xff] %vm758_vm1, %v752_v19  ;;  %v723_v23 = vadd.f32 %v722_v22, %v625_v20 }
 0x13a   : > { %v627_v24 = vpop.f32.mrf.mxu0  ;;  %v724_v25 = vpop.f32.mrf.mxu1 }
 0x13b   : > { %v753_v26 = vadd.f32 %v723_v23, %v335_v21 }
 0x13c   : > { %v630_v27 = vpop.f32.mrf.mxu0  ;;  %v727_v29 = vpop.f32.mrf.mxu1 }
 0x13d   : > { %770 = vst.msk [vmem:[#allocation2 + $0x58] sm:$0xff] %vm758_vm1, %v753_v26  ;;  %v728_v30 = vadd.f32 %v727_v29, %v630_v27 }
 0x13e   : > { %v632_v31 = vpop.f32.mrf.mxu0  ;;  %v729_v32 = vpop.f32.mrf.mxu1 }
 0x13f   : > { %v754_v33 = vadd.f32 %v728_v30, %v336_v28 }
 0x140   : > { %v633_v34 = vpop.f32.mrf.mxu0  ;;  %v730_v36 = vpop.f32.mrf.mxu1 }
 0x141   : > { %771 = vst.msk [vmem:[#allocation2 + $0x60] sm:$0xff] %vm758_vm1, %v754_v33  ;;  %v731_v37 = vadd.f32 %v730_v36, %v633_v34 }
 0x142   : > { %v635_v38 = vpop.f32.mrf.mxu0  ;;  %v732_v39 = vpop.f32.mrf.mxu1 }
 0x143   : > { %v755_v40 = vadd.f32 %v731_v37, %v337_v35 }
 0x144   : > { %v638_v41 = vpop.f32.mrf.mxu0  ;;  %v735_v43 = vpop.f32.mrf.mxu1 }
 0x145   : > { %772 = vst.msk [vmem:[#allocation2 + $0x68] sm:$0xff] %vm758_vm1, %v755_v40  ;;  %v736_v44 = vadd.f32 %v735_v43, %v638_v41 }
 0x146   : > { %v640_v45 = vpop.f32.mrf.mxu0  ;;  %v737_v46 = vpop.f32.mrf.mxu1 }
 0x147   : > { %v756_v47 = vadd.f32 %v736_v44, %v338_v42 }
 0x148   : > { %v641_v48 = vpop.f32.mrf.mxu0  ;;  %v738_v50 = vpop.f32.mrf.mxu1 }
 0x149   : > { %773 = vst.msk [vmem:[#allocation2 + $0x70] sm:$0xff] %vm758_vm1, %v756_v47  ;;  %v739_v51 = vadd.f32 %v738_v50, %v641_v48  ;;  %778 = sbr.rel (%p1145_p13) target bundleno = 682 (0x2aa), region = 63 }
 0x14a   : > { %v643_v52 = vpop.f32.mrf.mxu0  ;;  %v740_v53 = vpop.f32.mrf.mxu1 }
 0x14b   : > { %v757_v54 = vadd.f32 %v739_v51, %v339_v49 }
 0x14d   : > { %774 = vst.msk [vmem:[#allocation2 + $0x78] sm:$0xff] %vm758_vm1, %v757_v54 }
 0x14e   : > { %v779_v55 = vld [vmem:[#allocation2] sm:$0xff]  ;;  %v781_v56 = vld [vmem:[#allocation2 + $0x10] sm:$0xff]  ;;  %v780_v57 = vld [vmem:[#allocation2 + $0x8] sm:$0xff] }
 0x14f   : > { %v795_v58 = vsel %vm758_vm1, %v779_v55, -inf  ;;  %v801_v59 = vsel %vm758_vm1, %v781_v56, -inf  ;;  %v782_v60 = vld [vmem:[#allocation2 + $0x18] sm:$0xff]  ;;  %v798_v61 = vsel %vm758_vm1, %v780_v57, -inf  ;;  %v783_v63 = vld [vmem:[#allocation2 + $0x20] sm:$0xff]  ;;  %v784_v0 = vld [vmem:[#allocation2 + $0x28] sm:$0xff] }
 0x150   : > { %796 = vmax.xlane.f32.xlu0 %v795_v58  ;;  %802 = vmax.xlane.f32.xlu1 %v801_v59  ;;  %v804_v62 = vsel %vm758_vm1, %v782_v60, -inf  ;;  %v807_v1 = vsel %vm758_vm1, %v783_v63, -inf  ;;  %v810_v2 = vsel %vm758_vm1, %v784_v0, -inf  ;;  %v785_v3 = vld [vmem:[#allocation2 + $0x30] sm:$0xff]  ;;  %v786_v4 = vld [vmem:[#allocation2 + $0x38] sm:$0xff]  ;;  %v787_v7 = vld [vmem:[#allocation2 + $0x40] sm:$0xff] }
 0x151   : > { %v813_v5 = vsel %vm758_vm1, %v785_v3, -inf  ;;  %v816_v6 = vsel %vm758_vm1, %v786_v4, -inf  ;;  %v788_v8 = vld [vmem:[#allocation2 + $0x48] sm:$0xff]  ;;  %v819_v9 = vsel %vm758_vm1, %v787_v7, -inf  ;;  %v1619_v11 = vld [vmem:[#allocation2 + $0x50] sm:$0xff]  ;;  %v1621_v12 = vld [vmem:[#allocation2 + $0x58] sm:$0xff] }
 0x152   : > { %v822_v10 = vsel %vm758_vm1, %v788_v8, -inf  ;;  %v825_v13 = vsel %vm758_vm1, %v1619_v11, -inf  ;;  %v828_v14 = vsel %vm758_vm1, %v1621_v12, -inf  ;;  %v1627_v15 = vld [vmem:[#allocation2 + $0x60] sm:$0xff]  ;;  %v1629_v16 = vld [vmem:[#allocation2 + $0x68] sm:$0xff]  ;;  %v1635_v19 = vld [vmem:[#allocation2 + $0x70] sm:$0xff] }
 0x153   : > { %v831_v17 = vsel %vm758_vm1, %v1627_v15, -inf  ;;  %v834_v18 = vsel %vm758_vm1, %v1629_v16, -inf  ;;  %v837_v21 = vsel %vm758_vm1, %v1635_v19, -inf }
 0x154   : > { %799 = vmax.xlane.f32.xlu0 %v798_v61  ;;  %805 = vmax.xlane.f32.xlu1 %v804_v62  ;;  %v1637_v20 = vld [vmem:[#allocation2 + $0x78] sm:$0xff] }
 0x155   : > { %v840_v22 = vsel %vm758_vm1, %v1637_v20, -inf }
 0x158   : > { %808 = vmax.xlane.f32.xlu0 %v807_v1  ;;  %811 = vmax.xlane.f32.xlu1 %v810_v2 }
 0x15c   : > { %814 = vmax.xlane.f32.xlu0 %v813_v5  ;;  %817 = vmax.xlane.f32.xlu1 %v816_v6 }
 0x160   : > { %820 = vmax.xlane.f32.xlu0 %v819_v9  ;;  %823 = vmax.xlane.f32.xlu1 %v822_v10 }
 0x164   : > { %826 = vmax.xlane.f32.xlu0 %v825_v13  ;;  %829 = vmax.xlane.f32.xlu1 %v828_v14 }
 0x168   : > { %832 = vmax.xlane.f32.xlu0 %v831_v17  ;;  %835 = vmax.xlane.f32.xlu1 %v834_v18 }
 0x16c   : > { %838 = vmax.xlane.f32.xlu0 %v837_v21  ;;  %841 = vmax.xlane.f32.xlu1 %v840_v22 }
 0x1d9   : > { %v797_v23 = vpop.xlane.xlu0 %796  ;;  %v803_v24 = vpop.xlane.xlu1 %802 }
 0x1da   : > { %v1643_v25 = vsub.f32 %v779_v55, %v797_v23  ;;  %v1645_v26 = vsub.f32 %v781_v56, %v803_v24 }
 0x1dc   : > { %v859_v27 = vmul.f32 1.442695, %v1643_v25  ;;  %v863_v28 = vmul.f32 1.442695, %v1645_v26 }
 0x1dd   : > { %v800_v29 = vpop.xlane.xlu0 %799  ;;  %v806_v30 = vpop.xlane.xlu1 %805 }
 0x1de   : > { %1257 = vpow2.f32 %v859_v27  ;;  %v1649_v31 = vsub.f32 %v780_v57, %v800_v29  ;;  %v1651_v32 = vsub.f32 %v782_v60, %v806_v30 }
 0x1df   : > { %1259 = vpow2.f32 %v863_v28 }
 0x1e0   : > { %v861_v33 = vmul.f32 1.442695, %v1649_v31  ;;  %v865_v34 = vmul.f32 1.442695, %v1651_v32 }
 0x1e1   : > { %v809_v35 = vpop.xlane.xlu0 %808  ;;  %v812_v36 = vpop.xlane.xlu1 %811 }
 0x1e2   : > { %1261 = vpow2.f32 %v861_v33  ;;  %v1655_v37 = vsub.f32 %v783_v63, %v809_v35  ;;  %v1657_v38 = vsub.f32 %v784_v0, %v812_v36 }
 0x1e3   : > { %1263 = vpow2.f32 %v865_v34 }
 0x1e4   : > { %v867_v39 = vmul.f32 1.442695, %v1655_v37  ;;  %v869_v40 = vmul.f32 1.442695, %v1657_v38 }
 0x1e5   : > { %v815_v41 = vpop.xlane.xlu0 %814  ;;  %v818_v42 = vpop.xlane.xlu1 %817 }
 0x1e6   : > { %1265 = vpow2.f32 %v867_v39  ;;  %v1661_v43 = vsub.f32 %v785_v3, %v815_v41  ;;  %v1663_v44 = vsub.f32 %v786_v4, %v818_v42 }
 0x1e7   : > { %1267 = vpow2.f32 %v869_v40 }
 0x1e8   : > { %v871_v45 = vmul.f32 1.442695, %v1661_v43  ;;  %v873_v46 = vmul.f32 1.442695, %v1663_v44 }
 0x1e9   : > { %v821_v47 = vpop.xlane.xlu0 %820  ;;  %v824_v48 = vpop.xlane.xlu1 %823 }
 0x1ea   : > { %1269 = vpow2.f32 %v871_v45  ;;  %v1667_v49 = vsub.f32 %v787_v7, %v821_v47  ;;  %v1669_v50 = vsub.f32 %v788_v8, %v824_v48 }
 0x1eb   : > { %v1258_v51 = vpop.eup %1257  ;;  %1271 = vpow2.f32 %v873_v46 }
 0x1ec   : > { %v1260_v52 = vpop.eup %1259  ;;  %v875_v53 = vmul.f32 1.442695, %v1667_v49  ;;  %v877_v54 = vmul.f32 1.442695, %v1669_v50  ;;  %v891_v55 = vsel %vm758_vm1, %v1258_v51, 0.0 }
 0x1ed   : > { %892 = vadd.xlane.f32.xlu0 %v891_v55  ;;  %v827_v56 = vpop.xlane.xlu0 %826  ;;  %v830_v57 = vpop.xlane.xlu1 %829  ;;  %v897_v60 = vsel %vm758_vm1, %v1260_v52, 0.0 }
 0x1ee   : > { %1273 = vpow2.f32 %v875_v53  ;;  %v1675_v58 = vsub.f32 %v1619_v11, %v827_v56  ;;  %v1678_v59 = vsub.f32 %v1621_v12, %v830_v57 }
 0x1ef   : > { %v1262_v61 = vpop.eup %1261  ;;  %1275 = vpow2.f32 %v877_v54 }
 0x1f0   : > { %v1264_v62 = vpop.eup %1263  ;;  %v879_v63 = vmul.f32 1.442695, %v1675_v58  ;;  %v881_v0 = vmul.f32 1.442695, %v1678_v59  ;;  %v894_v1 = vsel %vm758_vm1, %v1262_v61, 0.0 }
 0x1f1   : > { %898 = vadd.xlane.f32.xlu0 %v897_v60  ;;  %895 = vadd.xlane.f32.xlu1 %v894_v1  ;;  %v833_v2 = vpop.xlane.xlu0 %832  ;;  %v836_v3 = vpop.xlane.xlu1 %835  ;;  %v900_v6 = vsel %vm758_vm1, %v1264_v62, 0.0 }
 0x1f2   : > { %1277 = vpow2.f32 %v879_v63  ;;  %v1685_v4 = vsub.f32 %v1627_v15, %v833_v2  ;;  %v1688_v5 = vsub.f32 %v1629_v16, %v836_v3 }
 0x1f3   : > { %v1266_v7 = vpop.eup %1265  ;;  %1279 = vpow2.f32 %v881_v0 }
 0x1f4   : > { %v1268_v8 = vpop.eup %1267  ;;  %v883_v9 = vmul.f32 1.442695, %v1685_v4  ;;  %v885_v10 = vmul.f32 1.442695, %v1688_v5  ;;  %v903_v11 = vsel %vm758_vm1, %v1266_v7, 0.0 }
 0x1f5   : > { %901 = vadd.xlane.f32.xlu1 %v900_v6  ;;  %904 = vadd.xlane.f32.xlu0 %v903_v11  ;;  %v839_v12 = vpop.xlane.xlu0 %838  ;;  %v842_v13 = vpop.xlane.xlu1 %841  ;;  %v906_v16 = vsel %vm758_vm1, %v1268_v8, 0.0 }
 0x1f6   : > { %1281 = vpow2.f32 %v883_v9  ;;  %v1695_v14 = vsub.f32 %v1635_v19, %v839_v12  ;;  %v1698_v15 = vsub.f32 %v1637_v20, %v842_v13 }
 0x1f7   : > { %v1270_v17 = vpop.eup %1269  ;;  %1283 = vpow2.f32 %v885_v10 }
 0x1f8   : > { %v1272_v18 = vpop.eup %1271  ;;  %v887_v21 = vmul.f32 1.442695, %v1695_v14  ;;  %v889_v22 = vmul.f32 1.442695, %v1698_v15  ;;  %v909_v23 = vsel %vm758_vm1, %v1270_v17, 0.0 }
 0x1f9   : > { %907 = vadd.xlane.f32.xlu1 %v906_v16  ;;  %910 = vadd.xlane.f32.xlu0 %v909_v23  ;;  %v912_v19 = vsel %vm758_vm1, %v1272_v18, 0.0 }
 0x1fa   : > { %1285 = vpow2.f32 %v887_v21 }
 0x1fb   : > { %v1274_v24 = vpop.eup %1273  ;;  %1287 = vpow2.f32 %v889_v22 }
 0x1fc   : > { %v1276_v20 = vpop.eup %1275  ;;  %v915_v27 = vsel %vm758_vm1, %v1274_v24, 0.0 }
 0x1fd   : > { %913 = vadd.xlane.f32.xlu1 %v912_v19  ;;  %916 = vadd.xlane.f32.xlu0 %v915_v27  ;;  %v918_v28 = vsel %vm758_vm1, %v1276_v20, 0.0 }
 0x1ff   : > { %v1278_v29 = vpop.eup %1277 }
 0x200   : > { %v1280_v30 = vpop.eup %1279  ;;  %v921_v33 = vsel %vm758_vm1, %v1278_v29, 0.0 }
 0x201   : > { %919 = vadd.xlane.f32.xlu1 %v918_v28  ;;  %922 = vadd.xlane.f32.xlu0 %v921_v33  ;;  %v924_v34 = vsel %vm758_vm1, %v1280_v30, 0.0 }
 0x203   : > { %v1282_v35 = vpop.eup %1281 }
 0x204   : > { %v1284_v36 = vpop.eup %1283  ;;  %v927_v39 = vsel %vm758_vm1, %v1282_v35, 0.0 }
 0x205   : > { %925 = vadd.xlane.f32.xlu1 %v924_v34  ;;  %928 = vadd.xlane.f32.xlu0 %v927_v39  ;;  %v930_v40 = vsel %vm758_vm1, %v1284_v36, 0.0 }
 0x207   : > { %v1286_v41 = vpop.eup %1285 }
 0x208   : > { %v1288_v42 = vpop.eup %1287  ;;  %v933_v45 = vsel %vm758_vm1, %v1286_v41, 0.0 }
 0x209   : > { %931 = vadd.xlane.f32.xlu1 %v930_v40  ;;  %934 = vadd.xlane.f32.xlu0 %v933_v45  ;;  %v936_v46 = vsel %vm758_vm1, %v1288_v42, 0.0 }
 0x20d   : > { %937 = vadd.xlane.f32.xlu1 %v936_v46 }
 0x276   : > { %v893_v47 = vpop.xlane.xlu0 %892 }
 0x277   : > { %1289 = vlog2.f32 %v893_v47 }
 0x27a   : > { %v896_v48 = vpop.xlane.xlu1 %895  ;;  %v899_v51 = vpop.xlane.xlu0 %898 }
 0x27b   : > { %1291 = vlog2.f32 %v896_v48 }
 0x27c   : > { %1293 = vlog2.f32 %v899_v51 }
 0x27e   : > { %v902_v52 = vpop.xlane.xlu1 %901  ;;  %v905_v53 = vpop.xlane.xlu0 %904 }
 0x27f   : > { %1295 = vlog2.f32 %v902_v52 }
 0x280   : > { %1297 = vlog2.f32 %v905_v53 }
 0x282   : > { %v908_v54 = vpop.xlane.xlu1 %907  ;;  %v911_v55 = vpop.xlane.xlu0 %910 }
 0x283   : > { %1299 = vlog2.f32 %v908_v54 }
 0x284   : > { %v1290_v56 = vpop.eup %1289  ;;  %1301 = vlog2.f32 %v911_v55 }
 0x285   : > { %v940_v57 = vmul.f32 0.6931472, %v1290_v56 }
 0x286   : > { %v914_v60 = vpop.xlane.xlu1 %913  ;;  %v917_v61 = vpop.xlane.xlu0 %916 }
 0x287   : > { %v971_v62 = vsub.f32 %v1643_v25, %v940_v57  ;;  %1303 = vlog2.f32 %v914_v60 }
 0x288   : > { %v1292_v63 = vpop.eup %1291  ;;  %1305 = vlog2.f32 %v917_v61 }
 0x289   : > { %v1294_v0 = vpop.eup %1293  ;;  %987 = vst.msk [vmem:[%s1536_s30] sm:$0xff] %vm758_vm1, %v971_v62  ;;  %v942_v1 = vmul.f32 0.6931472, %v1292_v63 }
 0x28a   : > { %v944_v2 = vmul.f32 0.6931472, %v1294_v0  ;;  %v920_v3 = vpop.xlane.xlu1 %919  ;;  %v923_v6 = vpop.xlane.xlu0 %922 }
 0x28b   : > { %v972_v7 = vsub.f32 %v1649_v31, %v942_v1  ;;  %1307 = vlog2.f32 %v920_v3 }
 0x28c   : > { %v1296_v8 = vpop.eup %1295  ;;  %v973_v9 = vsub.f32 %v1645_v26, %v944_v2  ;;  %1309 = vlog2.f32 %v923_v6 }
 0x28d   : > { %v1298_v25 = vpop.eup %1297  ;;  %988 = vst.msk [vmem:[%s1536_s30 + $0x8] sm:$0xff] %vm758_vm1, %v972_v7  ;;  %v946_v10 = vmul.f32 0.6931472, %v1296_v8 }
 0x28e   : > { %989 = vst.msk [vmem:[%s1536_s30 + $0x10] sm:$0xff] %vm758_vm1, %v973_v9  ;;  %v948_v11 = vmul.f32 0.6931472, %v1298_v25  ;;  %v926_v12 = vpop.xlane.xlu1 %925  ;;  %v929_v13 = vpop.xlane.xlu0 %928 }
 0x28f   : > { %v974_v16 = vsub.f32 %v1651_v32, %v946_v10  ;;  %1311 = vlog2.f32 %v926_v12 }
 0x290   : > { %v1300_v31 = vpop.eup %1299  ;;  %v975_v17 = vsub.f32 %v1655_v37, %v948_v11  ;;  %1313 = vlog2.f32 %v929_v13 }
 0x291   : > { %v1302_v26 = vpop.eup %1301  ;;  %990 = vst.msk [vmem:[%s1536_s30 + $0x18] sm:$0xff] %vm758_vm1, %v974_v16  ;;  %v950_v18 = vmul.f32 0.6931472, %v1300_v31 }
 0x292   : > { %991 = vst.msk [vmem:[%s1536_s30 + $0x20] sm:$0xff] %vm758_vm1, %v975_v17  ;;  %v952_v21 = vmul.f32 0.6931472, %v1302_v26  ;;  %v932_v22 = vpop.xlane.xlu1 %931  ;;  %v935_v23 = vpop.xlane.xlu0 %934 }
 0x293   : > { %v976_v19 = vsub.f32 %v1657_v38, %v950_v18  ;;  %1315 = vlog2.f32 %v932_v22 }
 0x294   : > { %v1304_v32 = vpop.eup %1303  ;;  %v977_v24 = vsub.f32 %v1661_v43, %v952_v21  ;;  %1317 = vlog2.f32 %v935_v23 }
 0x295   : > { %v1306_v37 = vpop.eup %1305  ;;  %992 = vst.msk [vmem:[%s1536_s30 + $0x28] sm:$0xff] %vm758_vm1, %v976_v19  ;;  %v954_v20 = vmul.f32 0.6931472, %v1304_v32 }
 0x296   : > { %993 = vst.msk [vmem:[%s1536_s30 + $0x30] sm:$0xff] %vm758_vm1, %v977_v24  ;;  %v956_v27 = vmul.f32 0.6931472, %v1306_v37  ;;  %v938_v28 = vpop.xlane.xlu1 %937 }
 0x297   : > { %v978_v29 = vsub.f32 %v1663_v44, %v954_v20  ;;  %1319 = vlog2.f32 %v938_v28 }
 0x298   : > { %v1308_v38 = vpop.eup %1307  ;;  %v979_v30 = vsub.f32 %v1667_v49, %v956_v27 }
 0x299   : > { %v1310_v33 = vpop.eup %1309  ;;  %994 = vst.msk [vmem:[%s1536_s30 + $0x38] sm:$0xff] %vm758_vm1, %v978_v29  ;;  %v958_v43 = vmul.f32 0.6931472, %v1308_v38 }
 0x29a   : > { %995 = vst.msk [vmem:[%s1536_s30 + $0x40] sm:$0xff] %vm758_vm1, %v979_v30  ;;  %v960_v34 = vmul.f32 0.6931472, %v1310_v33 }
 0x29b   : > { %v980_v35 = vsub.f32 %v1669_v50, %v958_v43 }
 0x29c   : > { %v1312_v36 = vpop.eup %1311  ;;  %v981_v39 = vsub.f32 %v1675_v58, %v960_v34 }
 0x29d   : > { %v1314_v40 = vpop.eup %1313  ;;  %996 = vst.msk [vmem:[%s1536_s30 + $0x48] sm:$0xff] %vm758_vm1, %v980_v35  ;;  %v962_v44 = vmul.f32 0.6931472, %v1312_v36 }
 0x29e   : > { %997 = vst.msk [vmem:[%s1536_s30 + $0x50] sm:$0xff] %vm758_vm1, %v981_v39  ;;  %v964_v49 = vmul.f32 0.6931472, %v1314_v40 }
 0x29f   : > { %v982_v41 = vsub.f32 %v1678_v59, %v962_v44 }
 0x2a0   : > { %v1316_v42 = vpop.eup %1315  ;;  %v983_v45 = vsub.f32 %v1685_v4, %v964_v49 }
 0x2a1   : > { %v1318_v46 = vpop.eup %1317  ;;  %998 = vst.msk [vmem:[%s1536_s30 + $0x58] sm:$0xff] %vm758_vm1, %v982_v41  ;;  %v966_v50 = vmul.f32 0.6931472, %v1316_v42 }
 0x2a2   : > { %999 = vst.msk [vmem:[%s1536_s30 + $0x60] sm:$0xff] %vm758_vm1, %v983_v45  ;;  %v968_v58 = vmul.f32 0.6931472, %v1318_v46 }
 0x2a3   : > { %v984_v47 = vsub.f32 %v1688_v5, %v966_v50 }
 0x2a4   : > { %v1320_v48 = vpop.eup %1319  ;;  %v985_v51 = vsub.f32 %v1695_v14, %v968_v58 }
 0x2a5   : > { %1000 = vst.msk [vmem:[%s1536_s30 + $0x68] sm:$0xff] %vm758_vm1, %v984_v47  ;;  %v970_v52 = vmul.f32 0.6931472, %v1320_v48 }
 0x2a6   : > { %1001 = vst.msk [vmem:[%s1536_s30 + $0x70] sm:$0xff] %vm758_vm1, %v985_v51 }
 0x2a7   : > { %v986_v59 = vsub.f32 %v1698_v15, %v970_v52 }
 0x2a9   : > { %1002 = vst.msk [vmem:[%s1536_s30 + $0x78] sm:$0xff] %vm758_vm1, %v986_v59 }
 0x2aa PF: > { %s13_s18 = sadd.s32 1, %s1375_s18   ;;  %s1786_s12 = smov %s1355_s13 }
 0x2ab   : > { %p10_p0 = scmp.ge.s32.totalorder %s13_s18, 10   ;;  %s1787_s13 = smov %s1448_s25 }
 0x2ac   : > { %s1788_s14 = smov %s1367_s16  ;;  %s1789_s15 = smov %s1371_s17 }
 0x2ad   : > { %s1790_s16 = smov %s1793_s19  ;;  %s1791_s17 = smov %s1797_s20 }
 0x2ae   :  { %12 = sbr.rel (!%p10_p0) target bundleno = 4 (0x4), region = 101 }

</bundles_post_ra>
